<compile_context>
chip_gen: v7x
topology: tpu7x:2x2x1
jax: 0.10.0
libtpu: 0.0.40
codegen_flags: <defaults>
</compile_context>

<pallas_src>
import functools

import jax
import jax.numpy as jnp
from jax import lax
from jax.experimental import pallas as pl
from jax.experimental.pallas import tpu as pltpu

INIT_RANGE = 0.02


def pooler_kernel(x_ref, w_ref, b_ref, o_ref, acc_ref):
    """One (tm, tn) output tile, accumulated over the k (d_model) axis.

    x_ref  : (tm, tk)  bf16   first-token activation tile
    w_ref  : (tn, tk)  bf16   weight tile, PyTorch (out, in) layout
    b_ref  : (1, tn)   f32    bias tile
    o_ref  : (tm, tn)  f32    output tile
    acc_ref: (tm, tn)  f32    VMEM accumulator (persists across k steps)
    """
    k = pl.program_id(2)

    @pl.when(k == 0)
    def _():
        acc_ref[...] = jnp.zeros_like(acc_ref)

    # x @ W.T for this tile: contract x's last dim with the weight's last dim
    # (trans_b semantics), so no transpose is ever materialized in HBM.
    acc_ref[...] += lax.dot_general(
        x_ref[...],
        w_ref[...],
        dimension_numbers=(((1,), (1,)), ((), ())),
        preferred_element_type=jnp.float32,
    )

    @pl.when(k == pl.num_programs(2) - 1)
    def _():
        # Fused epilogue on the f32 accumulator: bias add (VPU) + tanh (EUP).
        o_ref[...] = jnp.tanh(acc_ref[...] + b_ref[...]).astype(o_ref.dtype)


def _pick_tile(dim, preferred):
    for t in preferred:
        if dim % t == 0:
            return t
    return dim  # fall back to full extent (small / odd d_model)


def _round_up(x, m):
    return ((x + m - 1) // m) * m


@functools.partial(jax.jit, static_argnames=("compute_dtype",))
def pooler_forward(x, weight, bias, *, compute_dtype=jnp.bfloat16):
    """x: (B, S, D); weight: (D, D) in PyTorch (out, in) layout; bias: (D,).

    Returns tanh(x[:, 0] @ weight.T + bias) with shape (B, D).
    """
    B, S, D = x.shape
    out_dtype = x.dtype

    # First-token slice + bf16 cast here: a single tiny fused op on B*D
    # elements.  Folding the slice into the kernel would require casting the
    # full (B, S, D) input to bf16 first, which is strictly more HBM traffic.
    x0 = x[:, 0, :].astype(compute_dtype)

    # TODO(synk): in a real model the weight would already live in bf16; this
    # one-time cast only exists because the reference keeps f32 parameters.
    w = weight.astype(compute_dtype)
    b2 = bias.astype(jnp.float32).reshape(1, D)

    # Tile selection: lane-dense N tiles (>=128), K tiles sized for DMA/MXU
    # overlap, batch padded to a sublane multiple.
    tn = _pick_tile(D, (256, 512, 128))
    tk = _pick_tile(D, (512, 256, 128))
    tm = min(256, _round_up(B, 8))
    B_pad = _round_up(B, tm)
    if B_pad != B:
        x0 = jnp.pad(x0, ((0, B_pad - B), (0, 0)))

    grid = (B_pad // tm, D // tn, D // tk)

    itemsize = jnp.dtype(compute_dtype).itemsize
    cost = pl.CostEstimate(
        flops=2 * B_pad * D * D,
        transcendentals=B_pad * D,
        bytes_accessed=(B_pad * D + D * D) * itemsize
        + D * 4
        + B_pad * D * jnp.dtype(out_dtype).itemsize,
    )

    out = pl.pallas_call(
        pooler_kernel,
        out_shape=jax.ShapeDtypeStruct((B_pad, D), out_dtype),
        grid=grid,
        in_specs=[
            pl.BlockSpec((tm, tk), lambda m, n, k: (m, k)),   # x0 (first token)
            pl.BlockSpec((tn, tk), lambda m, n, k: (n, k)),   # weight, (out, in)
            pl.BlockSpec((1, tn), lambda m, n, k: (0, n)),    # bias
        ],
        out_specs=pl.BlockSpec((tm, tn), lambda m, n, k: (m, n)),
        scratch_shapes=[pltpu.VMEM((tm, tn), jnp.float32)],
        compiler_params=pltpu.CompilerParams(
            dimension_semantics=("parallel", "parallel", "arbitrary"),
        ),
        cost_estimate=cost,
    )(x0, w, b2)

    return out[:B]


def init_pooler_params(key, d_model):
    # Matches: self.linear.weight.data.normal_(std=INIT_RANGE); bias.zero_()
    weight = jax.random.normal(key, (d_model, d_model), jnp.float32) * INIT_RANGE
    bias = jnp.zeros((d_model,), jnp.float32)
    return weight, bias


if __name__ == "__main__":
    key = jax.random.PRNGKey(0)

    def run_case(B, S, D, k):
        kx, kw = jax.random.split(k)
        x = jax.random.normal(kx, (B, S, D), jnp.float32)
        weight, bias = init_pooler_params(kw, D)
        out = jax.block_until_ready(pooler_forward(x, weight, bias))
        ref = jnp.tanh(x[:, 0, :] @ weight.T + bias)
        assert out.shape == (B, D)
        # bf16 matmul inputs with f32 accumulation vs. the f32 reference.
        assert jnp.allclose(out, ref, atol=2e-2, rtol=2e-2), float(
            jnp.max(jnp.abs(out - ref))
        )
        return out

    k1, k2 = jax.random.split(key)
    # Small sanity shape (full-extent blocks).
    run_case(B=2, S=8, D=32, k=k1)
    # Realistic shape: exercises the (m, n, k) grid, k-accumulation, batch pad.
    run_case(B=2, S=8, D=1024, k=k2)

    print("KERNEL_OK")
</pallas_src>

<mosaic_0001>
module attributes {stable_mosaic.version = 11 : i64} {
  func.func @pooler_kernel(%arg0: i32, %arg1: i32, %arg2: i32, %arg3: memref<8x32xbf16, #tpu.memory_space<vmem>>, %arg4: memref<32x32xbf16, #tpu.memory_space<vmem>>, %arg5: memref<1x32xf32, #tpu.memory_space<vmem>>, %arg6: memref<8x32xf32, #tpu.memory_space<vmem>>, %arg7: memref<8x32xf32, #tpu.memory_space<vmem>>) attributes {dimension_semantics = [#tpu.dimension_semantics<parallel>, #tpu.dimension_semantics<parallel>, #tpu.dimension_semantics<arbitrary>], iteration_bounds = array<i64: 1, 1, 1>, scalar_prefetch = 0 : i64, scratch_operands = 1 : i64, tpu.core_type = #tpu.core_type<tc>, window_params = [{transform_indices = @transform_0, window_bounds = array<i64: 8, 32>}, {transform_indices = @transform_1, window_bounds = array<i64: 32, 32>}, {transform_indices = @transform_2, window_bounds = array<i64: 1, 32>}, {transform_indices = @transform_3, window_bounds = array<i64: 8, 32>}]} {
    %c0_i32 = arith.constant 0 : i32
    %0 = arith.cmpi eq, %arg2, %c0_i32 : i32
    %1 = arith.extui %0 : i1 to i32
    %c0_i32_0 = arith.constant 0 : i32
    %2 = arith.cmpi ne, %1, %c0_i32_0 : i32
    scf.if %2 {
      %cst_10 = arith.constant 0.000000e+00 : f32
      %12 = vector.broadcast %cst_10 : f32 to vector<8x32xf32>
      %c0_11 = arith.constant 0 : index
      %c0_12 = arith.constant 0 : index
      %13 = vector.load %arg7[%c0_11, %c0_12] : memref<8x32xf32, #tpu.memory_space<vmem>>, vector<8x32xf32>
      tpu.vector_store %arg7[%c0_11, %c0_12], %12 {strides = array<i32>} : memref<8x32xf32, #tpu.memory_space<vmem>>, vector<8x32xf32>,
    } else {
    }
    %c0 = arith.constant 0 : index
    %c0_1 = arith.constant 0 : index
    %3 = vector.load %arg7[%c0, %c0_1] : memref<8x32xf32, #tpu.memory_space<vmem>>, vector<8x32xf32>
    %c0_2 = arith.constant 0 : index
    %c0_3 = arith.constant 0 : index
    %4 = vector.load %arg3[%c0_2, %c0_3] : memref<8x32xbf16, #tpu.memory_space<vmem>>, vector<8x32xbf16>
    %c0_4 = arith.constant 0 : index
    %c0_5 = arith.constant 0 : index
    %5 = vector.load %arg4[%c0_4, %c0_5] : memref<32x32xbf16, #tpu.memory_space<vmem>>, vector<32x32xbf16>
    %cst = arith.constant dense<0.000000e+00> : vector<8x32xf32>
    %6 = tpu.matmul %4, %5, %cst {dimension_numbers = #tpu.dot_dimension_numbers<[1], [1], [0], [0], [0, 0, 1, 0], [], []>} : vector<8x32xbf16>, vector<32x32xbf16>, vector<8x32xf32> -> vector<8x32xf32>
    %7 = arith.addf %3, %6 : vector<8x32xf32>
    %c0_6 = arith.constant 0 : index
    %c0_7 = arith.constant 0 : index
    %8 = vector.load %arg7[%c0_6, %c0_7] : memref<8x32xf32, #tpu.memory_space<vmem>>, vector<8x32xf32>
    tpu.vector_store %arg7[%c0_6, %c0_7], %7 {strides = array<i32>} : memref<8x32xf32, #tpu.memory_space<vmem>>, vector<8x32xf32>,
    %c0_i32_8 = arith.constant 0 : i32
    %9 = arith.cmpi eq, %arg2, %c0_i32_8 : i32
    %10 = arith.extui %9 : i1 to i32
    %c0_i32_9 = arith.constant 0 : i32
    %11 = arith.cmpi ne, %10, %c0_i32_9 : i32
    scf.if %11 {
      %c0_10 = arith.constant 0 : index
      %c0_11 = arith.constant 0 : index
      %12 = vector.load %arg7[%c0_10, %c0_11] : memref<8x32xf32, #tpu.memory_space<vmem>>, vector<8x32xf32>
      %c0_12 = arith.constant 0 : index
      %c0_13 = arith.constant 0 : index
      %13 = vector.load %arg5[%c0_12, %c0_13] : memref<1x32xf32, #tpu.memory_space<vmem>>, vector<1x32xf32>
      %14 = vector.broadcast %13 : vector<1x32xf32> to vector<8x32xf32>
      %15 = arith.addf %12, %14 : vector<8x32xf32>
      %16 = math.tanh %15 : vector<8x32xf32>
      %c0_14 = arith.constant 0 : index
      %c0_15 = arith.constant 0 : index
      %17 = vector.load %arg6[%c0_14, %c0_15] : memref<8x32xf32, #tpu.memory_space<vmem>>, vector<8x32xf32>
      tpu.vector_store %arg6[%c0_14, %c0_15], %16 {strides = array<i32>} : memref<8x32xf32, #tpu.memory_space<vmem>>, vector<8x32xf32>,
    } else {
    }
    return
  }
  func.func @transform_0(%arg0: i32, %arg1: i32, %arg2: i32) -> (i32, i32) {
    %c0_i32 = arith.constant 0 : i32
    return %arg0, %arg2 : i32, i32
  }
  func.func @transform_1(%arg0: i32, %arg1: i32, %arg2: i32) -> (i32, i32) {
    %c0_i32 = arith.constant 0 : i32
    return %arg1, %arg2 : i32, i32
  }
  func.func @transform_2(%arg0: i32, %arg1: i32, %arg2: i32) -> (i32, i32) {
    %c0_i32 = arith.constant 0 : i32
    %c0_i32_0 = arith.constant 0 : i32
    return %c0_i32, %arg1 : i32, i32
  }
  func.func @transform_3(%arg0: i32, %arg1: i32, %arg2: i32) -> (i32, i32) {
    %c0_i32 = arith.constant 0 : i32
    return %arg0, %arg1 : i32, i32
  }
}

</mosaic_0001>

<bundles_post_ra>
// kernel: pooler_forward.1
= control target key start
LH: loop header
LB: loop body
LE: loop exit
PB: predicated region body
PF: predicated region fallthrough
CT: control target
= control target key end

     0   :  { %vm19_vm0 = vcmask 261120   ;;  %v128_v0 = vmov 0.0   ;;  %vm129_vm1 = vmmov 0   ;;  %s171_s1 = inlined_call_operand.vmem [shape: bf16[32,32], index: 1, kind: input, shape index: {}]   ;;  %s172_s0 = inlined_call_operand.vmem [shape: bf16[8,32], index: 0, kind: input, shape index: {}]   ;;  %s173_s2 = inlined_call_operand.vmem [shape: f32[1,32], index: 2, kind: input, shape index: {}]   ;;  %s174_s3 = inlined_call_operand.vmem [shape: f32[8,32], index: 3, kind: output, shape index: {}]  }
   0x1   :  { %20 = vst.msk [vmem:[#allocation2] sm:$0xff] %vm19_vm0, %v128_v0  ;;  %114 = vmatprep.subr.bf16.mxu0 %v128_v0  ;;  %v124_v1 = vld [vmem:[%s171_s1] sm:$0xff]   ;;  %118 = vmatprep.mubr.msk.bf16.mxu0 %vm129_vm1, %v128_v0  ;;  %v125_v3 = vld [vmem:[%s171_s1 + $0x8] sm:$0xff]  }
   0x2   :  { %v42_v2 = vsel %vm19_vm0, %v124_v1, 0  ;;  %v45_v4 = vsel %vm19_vm0, %v125_v3, 0  ;;  %v22_v5 = vld [vmem:[%s172_s0] sm:$0xf] }
   0x3   :  { %115 = vmatpush3.bf16.xpose.msra.mxu0 %v42_v2  ;;  %v110_v12 = vld [vmem:[%s173_s2] ss:$0 sm:$0xff] }
   0x4   :  { %116 = vmatprep.subr.bf16.mxu0 %v128_v0 }
   0x8   :  { %v21_v6 = vld [vmem:[#allocation2] sm:$0xff] }
   0xb   :  { %117 = vmatpush3.bf16.xpose.msra.mxu0 %v45_v4 }
  0x12   :  { %119 = vmatmul.mubr.msk.bf16.vlgmr.msra.gmra.mrb[0].mxu0 %vm19_vm0, %v22_v5 }
  0xe5   :  { %v81_v7 = vpop.f32.mrb[0].mxu0 }
  0xe6   :  { %v87_v8 = vadd.f32 %v81_v7, %v21_v6  ;;  %v120_v9 = vpop.f32.mrb[1].mxu0 }
  0xe7   :  { %v84_v10 = vpop.f32.mrb[2].mxu0 }
  0xe8   :  { %88 = vst.msk [vmem:[#allocation2] sm:$0xff] %vm19_vm0, %v87_v8  ;;  %v121_v11 = vpop.f32.mrb[3].mxu0 }
  0xef   :  { %v92_v13 = vld [vmem:[#allocation2] sm:$0xff] }
  0xf0   :  { %v100_v14 = vadd.f32 %v110_v12, %v92_v13 }
  0xf2   :  { %126 = vtanh.f32 %v100_v14 }
  0xfc   :  { %v127_v15 = vpop.eup %126 }
  0xfd   :  { %102 = vst.msk [vmem:[%s174_s3] sm:$0xff] %vm19_vm0, %v127_v15 }

</bundles_post_ra>
